<compile_context>
chip_gen: v5e
topology: v5e:2x2
jax: 0.10.0
libtpu: 0.0.40
codegen_flags: <defaults>
</compile_context>

<pallas_src>
import jax
import jax.numpy as jnp
from jax.experimental import pallas as pl
from jax.experimental.pallas import tpu as pltpu


# ---- packed-parameter slab layout: (16 rows x 39 cols, f32) -----------------
#   cols  0:4   -> W1  (16, 4)
#   col   4     -> b1  (16, 1)
#   cols  5:21  -> W2  (16, 16)
#   col  21     -> b2  (16, 1)
#   cols 22:38  -> W3  ( 2, 16)   (rows 0:2)
#   col  38     -> b3  ( 2, 1)    (rows 0:2)
_P_ROWS, _P_COLS = 16, 39


def _round_up(n, m):
    return ((n + m - 1) // m) * m


def dqn_kernel(p_ref, x_ref, o_ref):
    """Fused 3-layer MLP on one lane-dense batch tile.

    p_ref: (16, 39) packed params (VMEM-resident, constant block index)
    x_ref: (4,  TB) transposed state tile (batch on lanes)
    o_ref: (2,  TB) Q-values tile (batch on lanes)
    """
    x = x_ref[...]                                    # (4, TB)

    w1 = p_ref[:, 0:4]                                # (16, 4)
    b1 = p_ref[:, 4:5]                                # (16, 1)
    w2 = p_ref[:, 5:21]                               # (16, 16)
    b2 = p_ref[:, 21:22]                              # (16, 1)
    w3 = p_ref[0:2, 22:38]                            # (2, 16)
    b3 = p_ref[0:2, 38:39]                            # (2, 1)

    h1 = jnp.maximum(
        jnp.dot(w1, x, preferred_element_type=jnp.float32) + b1, 0.0)   # (16, TB)
    h2 = jnp.maximum(
        jnp.dot(w2, h1, preferred_element_type=jnp.float32) + b2, 0.0)  # (16, TB)
    out = jnp.dot(w3, h2, preferred_element_type=jnp.float32) + b3      # (2, TB)
    o_ref[...] = out.astype(o_ref.dtype)


def pack_params(params):
    """Pack PyTorch-native (out, in) weights + (out,) biases into one slab."""
    p = jnp.zeros((_P_ROWS, _P_COLS), jnp.float32)
    p = p.at[:, 0:4].set(params["w1"])
    p = p.at[:, 4:5].set(params["b1"][:, None])
    p = p.at[:, 5:21].set(params["w2"])
    p = p.at[:, 21:22].set(params["b2"][:, None])
    p = p.at[0:2, 22:38].set(params["w3"])
    p = p.at[0:2, 38:39].set(params["b3"][:, None])
    return p


def dqn_forward(x, packed_params, *, tb=512):
    """x: (B, 4) states.  packed_params: (16, 39) slab.  Returns (B, 2) Q-values."""
    x = jnp.asarray(x, jnp.float32)          # mirrors @to_torch float cast
    B = x.shape[0]

    # Batch tile on the lane axis: multiple of 128, capped at `tb`.
    tile = max(128, min(tb, _round_up(B, 128)))
    Bp = _round_up(B, tile)
    grid = (Bp // tile,)

    # Lane-dense layout: batch on lanes, features on sublanes (zero-pad tail).
    xt = jnp.zeros((4, Bp), jnp.float32).at[:, :B].set(x.T)

    flops = 2 * (16 * 4 + 16 * 16 + 2 * 16) * Bp            # 672 * Bp
    bytes_accessed = 4 * (4 * Bp + 2 * Bp + _P_ROWS * _P_COLS)

    out_t = pl.pallas_call(
        dqn_kernel,
        out_shape=jax.ShapeDtypeStruct((2, Bp), jnp.float32),
        grid_spec=pltpu.PrefetchScalarGridSpec(
            num_scalar_prefetch=0,
            grid=grid,
            in_specs=[
                # Packed params: constant block index -> DMA'd once, VMEM-resident.
                pl.BlockSpec((_P_ROWS, _P_COLS), lambda i: (0, 0)),
                # State tile: batch (lanes) indexed by the grid.
                pl.BlockSpec((4, tile), lambda i: (0, i)),
            ],
            out_specs=pl.BlockSpec((2, tile), lambda i: (0, i)),
        ),
        compiler_params=pltpu.CompilerParams(
            dimension_semantics=("parallel",),   # v7x: shard batch tiles over 2 TCs
        ),
        cost_estimate=pl.CostEstimate(
            flops=flops, transcendentals=0, bytes_accessed=bytes_accessed),
    )(packed_params, xt)

    return out_t[:, :B].T                     # back to (B, 2), PyTorch convention


def init_params(key):
    """Deterministic init mirroring nn.Linear's U(-1/sqrt(fan_in), 1/sqrt(fan_in)).

    Weights stored PyTorch-native as (out, in), biases as (out,).
    """
    dims = [(4, 16), (16, 16), (16, 2)]
    params = {}
    for i, (fan_in, fan_out) in enumerate(dims, start=1):
        key, kw, kb = jax.random.split(key, 3)
        bound = 1.0 / jnp.sqrt(float(fan_in))
        params[f"w{i}"] = jax.random.uniform(
            kw, (fan_out, fan_in), jnp.float32, minval=-bound, maxval=bound)
        params[f"b{i}"] = jax.random.uniform(
            kb, (fan_out,), jnp.float32, minval=-bound, maxval=bound)
    return params


def dqn_reference(x, params):
    """Pure-JAX reference (PyTorch-native weight layout) for correctness check."""
    h1 = jnp.maximum(x @ params["w1"].T + params["b1"], 0.0)
    h2 = jnp.maximum(h1 @ params["w2"].T + params["b2"], 0.0)
    return h2 @ params["w3"].T + params["b3"]


# TODO(synk): select_action's epsilon-greedy uses host-side Python RNG; only the
# network forward (the nn.Sequential) is implemented as a kernel.

if __name__ == "__main__":
    key = jax.random.PRNGKey(0)
    kp, kx = jax.random.split(key)
    params = init_params(kp)
    packed = pack_params(params)

    # Batch of 8 CartPole states, each of dim 4 (matches to_torch's float cast).
    x = jax.random.normal(kx, (8, 4), dtype=jnp.float32)

    out = dqn_forward(x, packed)
    out = jax.block_until_ready(out)

    ref = dqn_reference(x, params)
    assert out.shape == (8, 2)
    assert jnp.allclose(out, ref, atol=1e-5, rtol=1e-5), "mismatch vs reference"

    print("KERNEL_OK")
</pallas_src>

<mosaic_0001>
module attributes {stable_mosaic.version = 11 : i64} {
  func.func @dqn_kernel(%arg0: i32, %arg1: memref<16x39xf32, #tpu.memory_space<vmem>>, %arg2: memref<4x128xf32, #tpu.memory_space<vmem>>, %arg3: memref<2x128xf32, #tpu.memory_space<vmem>>) attributes {dimension_semantics = [#tpu.dimension_semantics<parallel>], iteration_bounds = array<i64: 1>, scalar_prefetch = 0 : i64, scratch_operands = 0 : i64, tpu.core_type = #tpu.core_type<tc>, window_params = [{pipeline_mode = #tpu.pipeline_mode<synchronous>, transform_indices = @transform_0, window_bounds = array<i64: 16, 39>}, {transform_indices = @transform_1, window_bounds = array<i64: 4, 128>}, {transform_indices = @transform_2, window_bounds = array<i64: 2, 128>}]} {
    %c0 = arith.constant 0 : index
    %c0_0 = arith.constant 0 : index
    %0 = vector.load %arg2[%c0, %c0_0] : memref<4x128xf32, #tpu.memory_space<vmem>>, vector<4x128xf32>
    %c0_1 = arith.constant 0 : index
    %c0_2 = arith.constant 0 : index
    %1 = vector.load %arg1[%c0_1, %c0_2] : memref<16x39xf32, #tpu.memory_space<vmem>>, vector<16x4xf32>
    %c0_3 = arith.constant 0 : index
    %c4 = arith.constant 4 : index
    %2 = vector.load %arg1[%c0_3, %c4] : memref<16x39xf32, #tpu.memory_space<vmem>>, vector<16x1xf32>
    %c0_4 = arith.constant 0 : index
    %c5 = arith.constant 5 : index
    %3 = vector.load %arg1[%c0_4, %c5] : memref<16x39xf32, #tpu.memory_space<vmem>>, vector<16x16xf32>
    %c0_5 = arith.constant 0 : index
    %c21 = arith.constant 21 : index
    %4 = vector.load %arg1[%c0_5, %c21] : memref<16x39xf32, #tpu.memory_space<vmem>>, vector<16x1xf32>
    %c0_6 = arith.constant 0 : index
    %c22 = arith.constant 22 : index
    %5 = vector.load %arg1[%c0_6, %c22] : memref<16x39xf32, #tpu.memory_space<vmem>>, vector<2x16xf32>
    %c0_7 = arith.constant 0 : index
    %c38 = arith.constant 38 : index
    %6 = vector.load %arg1[%c0_7, %c38] : memref<16x39xf32, #tpu.memory_space<vmem>>, vector<2x1xf32>
    %cst = arith.constant dense<0.000000e+00> : vector<16x128xf32>
    %7 = tpu.matmul %1, %0, %cst {dimension_numbers = #tpu.dot_dimension_numbers<[1], [0], [0], [1], [0, 0, 1, 1], [], []>} : vector<16x4xf32>, vector<4x128xf32>, vector<16x128xf32> -> vector<16x128xf32>
    %8 = vector.broadcast %2 : vector<16x1xf32> to vector<16x128xf32>
    %9 = arith.addf %7, %8 : vector<16x128xf32>
    %cst_8 = arith.constant 0.000000e+00 : f32
    %10 = vector.broadcast %cst_8 : f32 to vector<16x128xf32>
    %11 = arith.maximumf %9, %10 : vector<16x128xf32>
    %cst_9 = arith.constant dense<0.000000e+00> : vector<16x128xf32>
    %12 = tpu.matmul %3, %11, %cst_9 {dimension_numbers = #tpu.dot_dimension_numbers<[1], [0], [0], [1], [0, 0, 1, 1], [], []>} : vector<16x16xf32>, vector<16x128xf32>, vector<16x128xf32> -> vector<16x128xf32>
    %13 = vector.broadcast %4 : vector<16x1xf32> to vector<16x128xf32>
    %14 = arith.addf %12, %13 : vector<16x128xf32>
    %cst_10 = arith.constant 0.000000e+00 : f32
    %15 = vector.broadcast %cst_10 : f32 to vector<16x128xf32>
    %16 = arith.maximumf %14, %15 : vector<16x128xf32>
    %cst_11 = arith.constant dense<0.000000e+00> : vector<2x128xf32>
    %17 = tpu.matmul %5, %16, %cst_11 {dimension_numbers = #tpu.dot_dimension_numbers<[1], [0], [0], [1], [0, 0, 1, 1], [], []>} : vector<2x16xf32>, vector<16x128xf32>, vector<2x128xf32> -> vector<2x128xf32>
    %18 = vector.broadcast %6 : vector<2x1xf32> to vector<2x128xf32>
    %19 = arith.addf %17, %18 : vector<2x128xf32>
    %c0_12 = arith.constant 0 : index
    %c0_13 = arith.constant 0 : index
    %20 = vector.load %arg3[%c0_12, %c0_13] : memref<2x128xf32, #tpu.memory_space<vmem>>, vector<2x128xf32>
    tpu.vector_store %arg3[%c0_12, %c0_13], %19 {strides = array<i32>} : memref<2x128xf32, #tpu.memory_space<vmem>>, vector<2x128xf32>,
    return
  }
  func.func @transform_0(%arg0: i32) -> (i32, i32) {
    %c0_i32 = arith.constant 0 : i32
    %c0_i32_0 = arith.constant 0 : i32
    %c0_i32_1 = arith.constant 0 : i32
    return %c0_i32, %c0_i32_0 : i32, i32
  }
  func.func @transform_1(%arg0: i32) -> (i32, i32) {
    %c0_i32 = arith.constant 0 : i32
    %c0_i32_0 = arith.constant 0 : i32
    return %c0_i32, %arg0 : i32, i32
  }
  func.func @transform_2(%arg0: i32) -> (i32, i32) {
    %c0_i32 = arith.constant 0 : i32
    %c0_i32_0 = arith.constant 0 : i32
    return %c0_i32, %arg0 : i32, i32
  }
}

</mosaic_0001>

<bundles_post_ra>
// kernel: tpu_custom_call.1
= control target key start
LH: loop header
LB: loop body
LE: loop exit
PB: predicated region body
PF: predicated region fallthrough
CT: control target
= control target key end

     0   :  { %7 = vsyncpa [#allocation3], 0  ;;  %s317_s0 = inlined_call_operand.hbm [shape: f32[16,39], index: 0, kind: input, shape index: {}]   ;;  %s318_s1 = inlined_call_operand.hbm [shape: f32[4,128], index: 1, kind: input, shape index: {}]   ;;  %s319_s2 = inlined_call_operand.hbm [shape: f32[2,128], index: 2, kind: output, shape index: {}]  }
   0x1   :  { %8 = vsyncpa [#allocation6], 0 }
   0x2   :  { %9 = vsyncpa [#allocation4], 0  ;;  %s14_s11 = sshll.u32 %s317_s0, 4  ;;  %s280_s12 = smov [#allocation2]   ;;  %s15_s11 = int_to_ptr.hbm [resolvable:$true] %s14_s11 }
   0x3   :  { %s16_s13 = sshll.u32 %s280_s12, 4  ;;  %s28_s16 = sshll.u32 %s318_s1, 4  ;;  %s17_s13 = int_to_ptr.vmem [resolvable:$true] %s16_s13  ;;  %s29_s16 = int_to_ptr.hbm [resolvable:$true] %s28_s16 }
   0x4   :  { %s281_s17 = smov 128   ;;  %s282_s18 = smov 8  }
   0x5   :  { %22 = dma.hbm_to_vmem [thread:$0]  %s15_s11, 256, %s17_s13, [#allocation3], %s281_s17, %s281_s17, %s282_s18  }
   0x6   :  { %s283_s19 = smov [#allocation5]  }
   0x7   :  { %s30_s20 = sshll.u32 %s283_s19, 4  ;;  %s31_s20 = int_to_ptr.vmem [resolvable:$true] %s30_s20 }
   0x8   :  { %33 = dma.hbm_to_vmem [thread:$0]  %s29_s16, 64, %s31_s20, [#allocation6]  }
   0x9   :  { %274 = dma.done.wait [#allocation3], 256  }
   0xa   :  { %275 = vsyncadd [#allocation3], 4294967040 }
   0xb   :  { %276 = dma.done.wait [#allocation6], 64  }
   0xc   :  { %277 = vsyncadd [#allocation6], 4294967232  ;;  %v284_v0 = vmov 4   ;;  %vm61_vm0 = vcmask 1043456   ;;  %vm56_vm1 = vcmask 31744   ;;  %v43_v2 = vld [vmem:[#allocation2] sm:$0xff] }
   0xd   :  { %198 = vset.pattern.permute.xlu0 %v284_v0  ;;  %v42_v1 = vld [vmem:[#allocation5] sm:$0xf]  ;;  %v44_v3 = vld [vmem:[#allocation2 + $0x8] sm:$0xff]  ;;  %s285_s0 = smov 123   ;;  %v45_v4 = vld [vmem:[#allocation2] sm:$0x3] }
   0xe   :  { %180 = vmatpush.msk.msra.mxu0 %vm61_vm0, %v42_v1  ;;  %53 = vperm.xlu0 %198, %v44_v3   ;;  %s286_s1 = smov 106   ;;  %v287_v5 = vmov 21   ;;  %vm102_vm2 = vcmask 130048   ;;  %v288_v16 = vmov 38   ;;  %s289_s21 = smov [#allocation7]  }
   0xf   :  { %181 = vmatmul.msk.f32.vlgmr.msra.gmra.mxu0 %vm56_vm1, %v43_v2  ;;  %100 = vrot.lane.b32.xlu1 %v44_v3, %s285_s0  ;;  %s167_s22 = sshll.u32 %s289_s21, 4  ;;  %s169_s25 = sshll.u32 %s319_s2, 4  ;;  %s168_s22 = int_to_ptr.vmem [resolvable:$true] %s167_s22  ;;  %s170_s25 = int_to_ptr.hbm [resolvable:$true] %s169_s25 }
  0x10   :  { %199 = vset.pattern.permute.xlu2 %v287_v5  ;;  %200 = vset.pattern.permute.xlu1 %v288_v16 }
  0x11   :  { %95 = vperm.xlu2 %199, %v44_v3  }
  0x16   :  { %48 = vperm.xlu0 %198, %v43_v2  }
  0x17   :  { %182 = vmatmul.msk.f32.gmra.mxu0 %vm56_vm1, %v44_v3  ;;  %98 = vrot.lane.b32.xlu1 %v43_v2, %s285_s0 }
  0x19   :  { %91 = vperm.xlu2 %199, %v43_v2  }
  0x1e   :  { %137 = vrot.lane.b32.xlu0 %v45_v4, %s286_s1 }
  0x1f   :  { %201 = vset.pattern.permute.xlu0 %v288_v16  ;;  %134 = vperm.xlu1 %200, %v45_v4  }
  0x6b   :  { %v96_v17 = vpop.permute.xlu2 %95 }
  0x73   :  { %v92_v18 = vpop.permute.xlu2 %91 }
  0x80   :  { %v54_v6 = vpop.permute.xlu0 %53 }
  0x81   :  { %v101_v8 = vpop.permute.xlu1 %100 }
  0x88   :  { %v49_v9 = vpop.permute.xlu0 %48 }
  0x89   :  { %v99_v15 = vpop.permute.xlu1 %98 }
  0x8c   :  { %v82_v7 = vpop.f32.mrf.mxu0 }
  0x8d   :  { %v83_v11 = vadd.f32 %v82_v7, %v49_v9 }
  0x8f   :  { %v88_v14 = vmax.f32 %v83_v11, 0.0 }
  0x90   :  { %v138_v25 = vpop.permute.xlu0 %137 }
  0x91   :  { %v135_v26 = vpop.permute.xlu1 %134 }
  0x94   :  { %v85_v10 = vpop.f32.mrf.mxu0 }
  0x95   :  { %v86_v12 = vadd.f32 %v85_v10, %v54_v6 }
  0x97   :  { %v89_v13 = vmax.f32 %v86_v12, 0.0 }
  0x99   :  { %121 = vmatpush.msra.mxu1 %v89_v13  ;;  %186 = vmatpush.msra.mxu3 %v89_v13 }
  0x9b   :  { %122 = vmatpush.msra.mxu1 %v88_v14  ;;  %187 = vmatpush.msra.mxu3 %v88_v14 }
  0x9c   :  { %183 = vmatmul.msk.f32.vlgmr.msra.gmra.mxu1 %vm102_vm2, %v99_v15  ;;  %184 = vmatmul.msk.f32.vlgmr.msra.gmra.mxu3 %vm102_vm2, %v101_v8 }
 0x119   :  { %v124_v19 = vpop.f32.mrf.mxu1 }
 0x11a   :  { %v125_v21 = vadd.f32 %v124_v19, %v92_v18 }
 0x11c   :  { %v130_v24 = vmax.f32 %v125_v21, 0.0 }
 0x11f   :  { %v127_v20 = vpop.f32.mrf.mxu3 }
 0x120   :  { %v128_v22 = vadd.f32 %v127_v20, %v96_v17 }
 0x122   :  { %v131_v23 = vmax.f32 %v128_v22, 0.0 }
 0x124   :  { %155 = vmatpush.msra.mxu2 %v131_v23 }
 0x126   :  { %156 = vmatpush.msra.mxu2 %v130_v24 }
 0x127   :  { %185 = vmatmul.msk.f32.vlgmr.msra.gmra.mxu2 %vm102_vm2, %v138_v25 }
 0x1aa   :  { %v158_v27 = vpop.f32.mrf.mxu2 }
 0x1ab   :  { %v159_v28 = vadd.f32 %v158_v27, %v135_v26 }
 0x1ad   :  { %161 = vst [vmem:[#allocation7] sm:$0x3] %v159_v28 }
 0x1ae   :  { %172 = dma.vmem_to_hbm [thread:$0]  %s168_s22, 32, %s170_s25, [#allocation4]  }
 0x1af   :  { %278 = dma.done.wait [#allocation4], 32  }
 0x1b0   :  { %279 = vsyncadd [#allocation4], 4294967264 }
 0x1b1   :  { %177 = vsyncpa [#allocation3], 1 }
 0x1b2   :  { %178 = vsyncpa [#allocation6], 1 }
 0x1b3   :  { %179 = vsyncpa [#allocation4], 1 }

</bundles_post_ra>
